<compile_context>
chip_gen: v6e
topology: v6e:2x2x1
jax: 0.10.0
libtpu: 0.0.40
codegen_flags: <defaults>
</compile_context>

<pallas_src>
import functools

import jax
import jax.numpy as jnp
from jax.experimental import pallas as pl
from jax.experimental.pallas import tpu as pltpu

_NEG_BIG = -1e30  # finite "-inf" stand-in (avoids inf-inf / 0*inf NaNs)


def _round_up(x, m):
    return ((x + m - 1) // m) * m


def _col_stats_kernel(s_ref, colmax_ref, colsum_ref, *, inv_temp, n_rows, block_rows):
    """Pass 1: online column (dim 0) max / sum-of-exp of sim * inv_temp."""
    i = pl.program_id(0)
    tm, np_ = s_ref.shape

    @pl.when(i == 0)
    def _():
        colmax_ref[...] = jnp.full((1, np_), _NEG_BIG, dtype=jnp.float32)
        colsum_ref[...] = jnp.zeros((1, np_), dtype=jnp.float32)

    scaled = s_ref[...].astype(jnp.float32) * inv_temp
    if n_rows % block_rows != 0:
        # Padded rows must not contribute to the column softmax statistics.
        row = jax.lax.broadcasted_iota(jnp.int32, (tm, np_), 0) + i * block_rows
        scaled = jnp.where(row < n_rows, scaled, _NEG_BIG)

    tile_max = jnp.max(scaled, axis=0, keepdims=True)                 # (1, Np)
    new_max = jnp.maximum(colmax_ref[...], tile_max)
    tile_sum = jnp.sum(jnp.exp(scaled - new_max), axis=0, keepdims=True)
    colsum_ref[...] = colsum_ref[...] * jnp.exp(colmax_ref[...] - new_max) + tile_sum
    colmax_ref[...] = new_max


def _loss_kernel(s_ref, colmax_ref, colsum_ref, out_ref, *, inv_temp, n_rows,
                 block_rows):
    """Pass 2: loss = m1 + lse - diag(s2); no full logpt materialization."""
    i = pl.program_id(0)
    tm, np_ = s_ref.shape
    nf = float(n_rows)

    s = s_ref[...].astype(jnp.float32)

    # Column-softmax denominator: approx reciprocal (EUP) on the (1, Np) vector
    # plus one Newton step for ~f32 accuracy.
    denom = colsum_ref[...]
    r = pl.reciprocal(denom, approx=True)
    r = r * (2.0 - denom * r)

    col = jax.lax.broadcasted_iota(jnp.int32, (tm, np_), 1)
    arg = s * inv_temp - colmax_ref[...]
    if n_rows != np_:
        # Keep the exp argument finite on padded columns (their colmax is a
        # stat of zero-padding); avoids inf / 0*inf before the mask below.
        arg = jnp.where(col < n_rows, arg, _NEG_BIG)
    sm0 = jnp.exp(arg) * r                                            # (tm, Np)

    s2 = s * sm0 * nf
    if n_rows != np_:
        # Padded columns must not participate in the row log-sum-exp.
        s2 = jnp.where(col < n_rows, s2, _NEG_BIG)

    m1 = jnp.max(s2, axis=-1, keepdims=True)                          # (tm, 1)
    lse = jnp.log(jnp.sum(jnp.exp(s2 - m1), axis=-1, keepdims=True))  # (tm, 1)

    row = jax.lax.broadcasted_iota(jnp.int32, (tm, 1), 0) + i * block_rows
    diag = jnp.sum(jnp.where(col == row, s2, 0.0), axis=-1, keepdims=True)

    # loss stays in its natural (tm, 1) sublane layout; no relayout needed.
    out_ref[...] = (m1 + lse - diag).astype(out_ref.dtype)


def dual_softmax_loss(sim_matrix: jax.Array, temp: float = 1000.0,
                      block_rows: int | None = None) -> jax.Array:
    """Pallas TPU implementation of dual_softmax_loss.forward."""
    assert sim_matrix.ndim == 2 and sim_matrix.shape[0] == sim_matrix.shape[1], (
        "sim_matrix must be square (N, N)")
    n = int(sim_matrix.shape[0])
    inv_temp = 1.0 / float(temp)

    if block_rows is None:
        np_est = max(_round_up(n, 128), 128)
        # ~4 MiB per (tm, Np) f32 input tile; tm a multiple of 128 in [128, 256].
        tm = (4 * 1024 * 1024) // (np_est * 4)
        tm = max(128, min(256, (tm // 128) * 128))
        tm = min(tm, np_est)
    else:
        tm = block_rows
    assert tm % 128 == 0

    np_pad = max(_round_up(n, tm), tm)
    pad = np_pad - n
    sim_p = jnp.pad(sim_matrix, ((0, pad), (0, pad))) if pad else sim_matrix

    grid = (np_pad // tm,)
    tile_bytes = tm * np_pad * 4
    vmem_limit = int(min(64 * 1024 * 1024, max(32 * 1024 * 1024, 8 * tile_bytes)))

    col_stats = functools.partial(_col_stats_kernel, inv_temp=inv_temp,
                                  n_rows=n, block_rows=tm)
    loss_krnl = functools.partial(_loss_kernel, inv_temp=inv_temp,
                                  n_rows=n, block_rows=tm)

    # Pass 1: column statistics (accumulated across row tiles -> "arbitrary").
    colmax, colsum = pl.pallas_call(
        col_stats,
        out_shape=(jax.ShapeDtypeStruct((1, np_pad), jnp.float32),
                   jax.ShapeDtypeStruct((1, np_pad), jnp.float32)),
        grid_spec=pl.GridSpec(
            grid=grid,
            in_specs=[pl.BlockSpec((tm, np_pad), lambda i: (i, 0))],   # row tile
            out_specs=(pl.BlockSpec((1, np_pad), lambda i: (0, 0)),
                       pl.BlockSpec((1, np_pad), lambda i: (0, 0))),
        ),
        compiler_params=pltpu.CompilerParams(
            dimension_semantics=("arbitrary",),
            vmem_limit_bytes=vmem_limit,
        ),
    )(sim_p)

    # Pass 2: per-row-tile loss (independent tiles -> "parallel").
    out = pl.pallas_call(
        loss_krnl,
        out_shape=jax.ShapeDtypeStruct((np_pad, 1), jnp.float32),
        grid_spec=pl.GridSpec(
            grid=grid,
            in_specs=[pl.BlockSpec((tm, np_pad), lambda i: (i, 0)),    # row tile
                      pl.BlockSpec((1, np_pad), lambda i: (0, 0)),     # colmax
                      pl.BlockSpec((1, np_pad), lambda i: (0, 0))],    # colsum
            out_specs=pl.BlockSpec((tm, 1), lambda i: (i, 0)),
        ),
        compiler_params=pltpu.CompilerParams(
            dimension_semantics=("parallel",),
            vmem_limit_bytes=vmem_limit,
        ),
    )(sim_p, colmax, colsum)

    return out[:n, 0]


def _reference(sim_matrix, temp=1000.0):
    n = sim_matrix.shape[0]
    s = sim_matrix * jax.nn.softmax(sim_matrix / temp, axis=0) * n
    logpt = jax.nn.log_softmax(s, axis=-1)
    return -jnp.diag(logpt)


if __name__ == "__main__":
    # Original module-sized case: batch of 8 video/text pairs -> (8, 8) matrix.
    sim8 = jax.random.normal(jax.random.PRNGKey(0), (8, 8), dtype=jnp.float32)
    loss8 = dual_softmax_loss(sim8, temp=1000.0)
    jax.block_until_ready(loss8)
    ref8 = _reference(sim8, temp=1000.0)
    assert loss8.shape == (8,)
    assert jnp.allclose(loss8, ref8, atol=2e-4, rtol=2e-4), \
        float(jnp.max(jnp.abs(loss8 - ref8)))

    # Larger case: exercises multi-tile accumulation (Np=512, tm=256 -> grid of 2)
    # and the padding/masking path (500 % 128 != 0).
    n = 500
    sim = jax.random.normal(jax.random.PRNGKey(1), (n, n), dtype=jnp.float32)
    loss = dual_softmax_loss(sim, temp=1000.0)
    jax.block_until_ready(loss)
    ref = _reference(sim, temp=1000.0)
    assert loss.shape == (n,)
    assert jnp.allclose(loss, ref, atol=2e-4, rtol=2e-4), \
        float(jnp.max(jnp.abs(loss - ref)))

    print("KERNEL_OK")
</pallas_src>

<mosaic_0001>
module attributes {stable_mosaic.version = 11 : i64} {
  func.func @_col_stats_kernel(%arg0: i32, %arg1: memref<128x128xf32, #tpu.memory_space<vmem>>, %arg2: memref<1x128xf32, #tpu.memory_space<vmem>>, %arg3: memref<1x128xf32, #tpu.memory_space<vmem>>) attributes {dimension_semantics = [#tpu.dimension_semantics<arbitrary>], iteration_bounds = array<i64: 1>, scalar_prefetch = 0 : i64, scratch_operands = 0 : i64, tpu.core_type = #tpu.core_type<tc>, window_params = [{transform_indices = @transform_0, window_bounds = array<i64: 128, 128>}, {pipeline_mode = #tpu.pipeline_mode<synchronous>, transform_indices = @transform_1, window_bounds = array<i64: 1, 128>}, {pipeline_mode = #tpu.pipeline_mode<synchronous>, transform_indices = @transform_2, window_bounds = array<i64: 1, 128>}]} {
    %c0_i32 = arith.constant 0 : i32
    %0 = arith.cmpi eq, %arg0, %c0_i32 : i32
    %1 = arith.extui %0 : i1 to i32
    %c0_i32_0 = arith.constant 0 : i32
    %2 = arith.cmpi ne, %1, %c0_i32_0 : i32
    scf.if %2 {
      %cst_15 = arith.constant -1.000000e+30 : f32
      %31 = vector.broadcast %cst_15 : f32 to vector<1x128xf32>
      %c0_16 = arith.constant 0 : index
      %c0_17 = arith.constant 0 : index
      %32 = vector.load %arg2[%c0_16, %c0_17] : memref<1x128xf32, #tpu.memory_space<vmem>>, vector<1x128xf32>
      tpu.vector_store %arg2[%c0_16, %c0_17], %31 {strides = array<i32>} : memref<1x128xf32, #tpu.memory_space<vmem>>, vector<1x128xf32>,
      %cst_18 = arith.constant 0.000000e+00 : f32
      %33 = vector.broadcast %cst_18 : f32 to vector<1x128xf32>
      %c0_19 = arith.constant 0 : index
      %c0_20 = arith.constant 0 : index
      %34 = vector.load %arg3[%c0_19, %c0_20] : memref<1x128xf32, #tpu.memory_space<vmem>>, vector<1x128xf32>
      tpu.vector_store %arg3[%c0_19, %c0_20], %33 {strides = array<i32>} : memref<1x128xf32, #tpu.memory_space<vmem>>, vector<1x128xf32>,
    } else {
    }
    %c0 = arith.constant 0 : index
    %c0_1 = arith.constant 0 : index
    %3 = vector.load %arg1[%c0, %c0_1] : memref<128x128xf32, #tpu.memory_space<vmem>>, vector<128x128xf32>
    %cst = arith.constant 1.000000e-03 : f32
    %4 = vector.broadcast %cst : f32 to vector<128x128xf32>
    %5 = arith.mulf %3, %4 : vector<128x128xf32>
    %6 = tpu.iota {dimensions = array<i32: 0>} : vector<128x128xi32>
    %c128_i32 = arith.constant 128 : i32
    %7 = arith.muli %arg0, %c128_i32 : i32
    %8 = vector.broadcast %7 : i32 to vector<128x128xi32>
    %9 = arith.addi %6, %8 : vector<128x128xi32>
    %c8_i32 = arith.constant 8 : i32
    %10 = vector.broadcast %c8_i32 : i32 to vector<128x128xi32>
    %11 = arith.cmpi slt, %9, %10 : vector<128x128xi32>
    %cst_2 = arith.constant -1.000000e+30 : f32
    %12 = vector.broadcast %cst_2 : f32 to vector<128x128xf32>
    %13 = arith.select %11, %5, %12 : vector<128x128xi1>, vector<128x128xf32>
    %cst_3 = arith.constant dense<0xFF800000> : vector<128xf32>
    %14 = vector.multi_reduction <maximumf>, %13, %cst_3 [0] : vector<128x128xf32> to vector<128xf32>
    %15 = vector.shape_cast %14 : vector<128xf32> to vector<1x128xf32>
    %c0_4 = arith.constant 0 : index
    %c0_5 = arith.constant 0 : index
    %16 = vector.load %arg2[%c0_4, %c0_5] : memref<1x128xf32, #tpu.memory_space<vmem>>, vector<1x128xf32>
    %17 = arith.maximumf %16, %15 : vector<1x128xf32>
    %18 = vector.broadcast %17 : vector<1x128xf32> to vector<128x128xf32>
    %19 = arith.subf %13, %18 : vector<128x128xf32>
    %20 = math.exp %19 : vector<128x128xf32>
    %cst_6 = arith.constant dense<0.000000e+00> : vector<128xf32>
    %21 = vector.multi_reduction <add>, %20, %cst_6 [0] : vector<128x128xf32> to vector<128xf32>
    %22 = vector.shape_cast %21 : vector<128xf32> to vector<1x128xf32>
    %c0_7 = arith.constant 0 : index
    %c0_8 = arith.constant 0 : index
    %23 = vector.load %arg3[%c0_7, %c0_8] : memref<1x128xf32, #tpu.memory_space<vmem>>, vector<1x128xf32>
    %c0_9 = arith.constant 0 : index
    %c0_10 = arith.constant 0 : index
    %24 = vector.load %arg2[%c0_9, %c0_10] : memref<1x128xf32, #tpu.memory_space<vmem>>, vector<1x128xf32>
    %25 = arith.subf %24, %17 : vector<1x128xf32>
    %26 = math.exp %25 : vector<1x128xf32>
    %27 = arith.mulf %23, %26 : vector<1x128xf32>
    %28 = arith.addf %27, %22 : vector<1x128xf32>
    %c0_11 = arith.constant 0 : index
    %c0_12 = arith.constant 0 : index
    %29 = vector.load %arg3[%c0_11, %c0_12] : memref<1x128xf32, #tpu.memory_space<vmem>>, vector<1x128xf32>
    tpu.vector_store %arg3[%c0_11, %c0_12], %28 {strides = array<i32>} : memref<1x128xf32, #tpu.memory_space<vmem>>, vector<1x128xf32>,
    %c0_13 = arith.constant 0 : index
    %c0_14 = arith.constant 0 : index
    %30 = vector.load %arg2[%c0_13, %c0_14] : memref<1x128xf32, #tpu.memory_space<vmem>>, vector<1x128xf32>
    tpu.vector_store %arg2[%c0_13, %c0_14], %17 {strides = array<i32>} : memref<1x128xf32, #tpu.memory_space<vmem>>, vector<1x128xf32>,
    return
  }
  func.func @transform_0(%arg0: i32) -> (i32, i32) {
    %c0_i32 = arith.constant 0 : i32
    %c0_i32_0 = arith.constant 0 : i32
    return %arg0, %c0_i32 : i32, i32
  }
  func.func @transform_1(%arg0: i32) -> (i32, i32) {
    %c0_i32 = arith.constant 0 : i32
    %c0_i32_0 = arith.constant 0 : i32
    %c0_i32_1 = arith.constant 0 : i32
    return %c0_i32, %c0_i32_0 : i32, i32
  }
  func.func @transform_2(%arg0: i32) -> (i32, i32) {
    %c0_i32 = arith.constant 0 : i32
    %c0_i32_0 = arith.constant 0 : i32
    %c0_i32_1 = arith.constant 0 : i32
    return %c0_i32, %c0_i32_0 : i32, i32
  }
}

</mosaic_0001>

<bundles_post_ra>
// kernel: tpu_custom_call.1
= control target key start
LH: loop header
LB: loop body
LE: loop exit
PB: predicated region body
PF: predicated region fallthrough
CT: control target
= control target key end

     0   :  { %8 = vsyncpa [#allocation3], 0  ;;  %s376_s0 = inlined_call_operand.hbm [shape: f32[128,128], index: 0, kind: input, shape index: {}]   ;;  %s377_s1 = inlined_call_operand.hbm [shape: f32[1,128], index: 1, kind: output, shape index: {0}]   ;;  %s378_s2 = inlined_call_operand.hbm [shape: f32[1,128], index: 2, kind: output, shape index: {1}]  }
   0x1   :  { %9 = vsyncpa [#allocation4], 0 }
   0x2   :  { %10 = vsyncpa [#allocation7], 0  ;;  %s345_s9 = smov [#allocation2]  }
   0x3   :  { %s16_s10 = sshll.u32 %s345_s9, 4  ;;  %s17_s10 = int_to_ptr.vmem [resolvable:$true] %s16_s10 }
   0x4   :  { %s287_s11 = scalar_lea.vmem %s17_s10, 2048  ;;  %p292_p1 = scmp.lt.s32.totalorder %s17_s10, %s17_s10 }
   0x5   :  { %p288_p0 = scmp.ne.s32.totalorder %s17_s10, %s287_s11  ;;  %p293_p2 = scmp.lt.s32.totalorder %s287_s11, %s287_s11 }
   0x7   :  { %p294_p3 = por %p293_p2, %p292_p1 }
   0x9   :  { %p295_p4 = pnand %p294_p3, %p288_p0 }
   0xb   :  { %298 = shalt.err (!%p295_p4)
}
   0xc   :  { %s346_s12 = smov 128   ;;  %s347_s13 = smov 8  }
   0xd   :  { %22 = dma.hbm_to_vmem [thread:$0]  %s376_s0, 2048, %s17_s10, [#allocation3], %s346_s12, %s346_s12, %s347_s13  }
   0xe   :  { %339 = dma.done.wait [#allocation3], 2048  }
   0xf   :  { %340 = vsyncadd [#allocation3], 4294965248  ;;  %v348_v0 = vmov -1e+30   ;;  %v349_v1 = vmov 0.0   ;;  %v32_v2 = vld [vmem:[#allocation2] sm:$0xff]  ;;  %v155_v11 = vlaneseq }
  0x10   :  { %30 = vst [vmem:[#allocation5] sm:$0x1] %v348_v0  ;;  %31 = vst [vmem:[#allocation6] sm:$0x1] %v349_v1  ;;  %v48_v3 = vmul.f32 0.001, %v32_v2 }
  0x11   :  { %v156_v14 = vshrl.u32 %v155_v11, 7  ;;  %s350_s0 = smov [#allocation5]  }
  0x12   :  { %v131_v4 = vmax.f32 %v48_v3, -1e+30  ;;  %s243_s16 = sshll.u32 %s350_s0, 4  ;;  %s244_s16 = int_to_ptr.vmem [resolvable:$true] %s243_s16 }
  0x13   :  { %v157_v18 = vsub.s32 0, %v156_v14  ;;  %s299_s17 = scalar_lea.vmem %s244_s16, 16  ;;  %s303_s18 = scalar_lea.vmem %s244_s16, 32 }
  0x14   :  { %v135_v5 = vmax.f32 %v131_v4, -1e+30  ;;  %p300_p5 = scmp.ne.s32.totalorder %s244_s16, %s299_s17  ;;  %p304_p6 = scmp.lt.s32.totalorder %s244_s16, %s244_s16 }
  0x15   :  { %p305_p7 = scmp.lt.s32.totalorder %s303_s18, %s299_s17 }
  0x16   :  { %v139_v6 = vmax.f32 %v135_v5, -1e+30 }
  0x17   :  { %v152_v16 = vld [vmem:[#allocation5] sm:$0x1]  ;;  %p306_p8 = por %p305_p7, %p304_p6 }
  0x18   :  { %v143_v7 = vmax.f32 %v139_v6, -1e+30 }
  0x19   :  { %p307_p9 = pnand %p306_p8, %p300_p5 }
  0x1a   :  { %v145_v8 = vmax.f32 %v143_v7, -1e+30 }
  0x1c   :  { %v146_v9 = vrot.slane %v145_v8, 4 }
  0x1e   :  { %v147_v10 = vmax.f32 %v145_v8, %v146_v9 }
  0x20   :  { %v148_v12 = vrot.slane %v147_v10, 2 }
  0x22   :  { %v149_v13 = vmax.f32 %v147_v10, %v148_v12 }
  0x24   :  { %v150_v15 = vrot.slane %v149_v13, 1 }
  0x26   :  { %v151_v17 = vmax.f32 %v149_v13, %v150_v15 }
  0x28   :  { %v153_v19 = vmax.f32 %v152_v16, %v151_v17 }
  0x2a   :  { %v158_v20 = vrot.slane %v153_v19, %v157_v18  ;;  %236 = vst [vmem:[#allocation5] sm:$0x1] %v153_v19 }
  0x2b   :  { %310 = shalt.err (!%p307_p9)
}
  0x2c   :  { %246 = dma.vmem_to_hbm [thread:$0]  %s244_s16, 16, %s377_s1, [#allocation4]   ;;  %v160_v21 = vsub.f32 %v48_v3, %v158_v20  ;;  %v161_v22 = vsub.f32 -1e+30, %v158_v20  ;;  %v230_v35 = vsub.f32 %v152_v16, %v153_v19  ;;  %v229_v49 = vld [vmem:[#allocation6] sm:$0x1] }
  0x2d   :  { %s351_s1 = smov [#allocation6]  }
  0x2e   :  { %v176_v23 = vmul.f32 1.442695, %v160_v21  ;;  %v178_v24 = vmul.f32 1.442695, %v161_v22  ;;  %v231_v38 = vmul.f32 1.442695, %v230_v35 }
  0x2f   :  { %s253_s21 = sshll.u32 %s351_s1, 4  ;;  %s254_s21 = int_to_ptr.vmem [resolvable:$true] %s253_s21 }
  0x30   :  { %273 = vpow2.f32 %v176_v23  ;;  %s319_s22 = scalar_lea.vmem %s254_s21, 16  ;;  %s323_s23 = scalar_lea.vmem %s254_s21, 32 }
  0x31   :  { %275 = vpow2.f32 %v178_v24  ;;  %p320_p10 = scmp.ne.s32.totalorder %s254_s21, %s319_s22  ;;  %p324_p11 = scmp.lt.s32.totalorder %s254_s21, %s254_s21 }
  0x32   :  { %277 = vpow2.f32 %v231_v38  ;;  %p325_p12 = scmp.lt.s32.totalorder %s323_s23, %s319_s22 }
  0x34   :  { %p326_p13 = por %p325_p12, %p324_p11 }
  0x36   :  { %p327_p0 = pnand %p326_p13, %p320_p10 }
  0x3d   :  { %v274_v25 = vpop.eup %273 }
  0x3e   :  { %v276_v26 = vpop.eup %275 }
  0x3f   :  { %v208_v27 = vadd.f32 %v276_v26, %v274_v25  ;;  %v278_v48 = vpop.eup %277 }
  0x40   :  { %v233_v52 = vmul.f32 %v278_v48, %v229_v49 }
  0x41   :  { %v209_v28 = vadd.f32 %v276_v26, %v208_v27 }
  0x43   :  { %v210_v29 = vadd.f32 %v276_v26, %v209_v28 }
  0x45   :  { %v211_v30 = vadd.f32 %v276_v26, %v210_v29 }
  0x47   :  { %v212_v31 = vadd.f32 %v276_v26, %v211_v30 }
  0x49   :  { %v213_v32 = vadd.f32 %v276_v26, %v212_v31 }
  0x4b   :  { %v214_v33 = vadd.f32 %v276_v26, %v213_v32 }
  0x4d   :  { %v215_v34 = vadd.f32 %v276_v26, %v214_v33 }
  0x4f   :  { %v216_v36 = vadd.f32 %v276_v26, %v215_v34 }
  0x51   :  { %v217_v37 = vadd.f32 %v276_v26, %v216_v36 }
  0x53   :  { %v218_v39 = vadd.f32 %v276_v26, %v217_v37 }
  0x55   :  { %v219_v40 = vadd.f32 %v276_v26, %v218_v39 }
  0x57   :  { %v220_v41 = vadd.f32 %v276_v26, %v219_v40 }
  0x59   :  { %v221_v42 = vadd.f32 %v276_v26, %v220_v41 }
  0x5b   :  { %v222_v43 = vadd.f32 %v276_v26, %v221_v42 }
  0x5d   :  { %v223_v44 = vrot.slane %v222_v43, 4 }
  0x5f   :  { %v224_v45 = vadd.f32 %v223_v44, %v222_v43 }
  0x61   :  { %v225_v46 = vrot.slane %v224_v45, 2 }
  0x63   :  { %v226_v47 = vadd.f32 %v225_v46, %v224_v45 }
  0x65   :  { %v227_v50 = vrot.slane %v226_v47, 1 }
  0x67   :  { %v228_v51 = vadd.f32 %v227_v50, %v226_v47 }
  0x69   :  { %v234_v53 = vadd.f32 %v233_v52, %v228_v51 }
  0x6b   :  { %235 = vst [vmem:[#allocation6] sm:$0x1] %v234_v53 }
  0x6c   :  { %330 = shalt.err (!%p327_p0)
}
  0x6d   :  { %256 = dma.vmem_to_hbm [thread:$0]  %s254_s21, 16, %s378_s2, [#allocation7]  }
  0x6e   :  { %341 = dma.done.wait [#allocation4], 16  }
  0x6f   :  { %342 = vsyncadd [#allocation4], 4294967280 }
  0x70   :  { %343 = dma.done.wait [#allocation7], 16  }
  0x71   :  { %344 = vsyncadd [#allocation7], 4294967280 }
  0x72   :  { %263 = vsyncpa [#allocation3], 1 }
  0x73   :  { %264 = vsyncpa [#allocation4], 1 }
  0x74   :  { %265 = vsyncpa [#allocation7], 1 }

</bundles_post_ra>
